<compile_context>
chip_gen: v7x
topology: tpu7x:2x2x1
jax: 0.10.0
libtpu: 0.0.40
codegen_flags: <defaults>
</compile_context>

<pallas_src>
import functools

import jax
import jax.numpy as jnp
from jax.experimental import pallas as pl
from jax.experimental.pallas import tpu as pltpu


def _square_kernel(x_ref, o_ref):
    x = x_ref[...]
    o_ref[...] = x * x


@functools.lru_cache(maxsize=None)
def _chip_config():
    """Per-generation tiling knobs, keyed off VMEM capacity at trace time."""
    vmem = None
    try:
        vmem = getattr(pltpu.get_tpu_info(), "vmem_capacity_bytes", None)
    except Exception:
        vmem = None
    if not vmem:
        vmem = 64 * 1024 * 1024  # conservative default (v7x per-TC VMEM)

    if vmem >= 100 * 1024 * 1024:
        # v5e / v6e: 128 MiB VMEM, single TensorCore per chip.
        return {
            "block_bytes": 8 * 1024 * 1024,
            "vmem_limit": 64 * 1024 * 1024,
            "small_bytes": 2 * 1024 * 1024,
            "buffers": 3,           # 3 in + 3 out x 8 MiB = 48 MiB resident
            "two_core": False,
        }
    # v7x-class: 64 MiB VMEM per TC, 2 TensorCores per chip.
    return {
        "block_bytes": 8 * 1024 * 1024,
        "vmem_limit": 48 * 1024 * 1024,
        "small_bytes": 1 * 1024 * 1024,  # mid-size inputs shouldn't take grid=(1,)
        "buffers": 2,               # 2 in + 2 out x 8 MiB = 32 MiB resident
        "two_core": True,
    }


def _round_up(n, m):
    return ((n + m - 1) // m) * m


def _make_spec(block_shape, buffer_count):
    index_map = lambda i: (i, 0)
    if buffer_count != 2:
        try:
            return pl.BlockSpec(block_shape, index_map,
                                pipeline_mode=pl.Buffered(buffer_count))
        except (TypeError, AttributeError):
            pass  # older jax: fall back to default double-buffering
    return pl.BlockSpec(block_shape, index_map)


def _square_2d(x2d: jax.Array, cfg) -> jax.Array:
    """Square a 2-D array; the lane (last) dim is kept full-extent in the block."""
    rows, lanes = x2d.shape
    itemsize = jnp.dtype(x2d.dtype).itemsize
    granule = max(8, 32 // itemsize)       # packed-sublane granule per dtype
    row_bytes = lanes * itemsize
    total_bytes = rows * row_bytes

    if total_bytes <= cfg["small_bytes"]:
        tile_r = rows                      # single full-extent block
    else:
        tile_r = max(granule,
                     (cfg["block_bytes"] // row_bytes) // granule * granule)
        if cfg["two_core"]:
            # Guarantee >= 2 grid steps so both TensorCores can stream.
            tile_r = min(tile_r,
                         max(granule, _round_up(pl.cdiv(rows, 2), granule)))
        if tile_r >= rows:
            tile_r = rows                  # full extent: always a legal block

    n_steps = pl.cdiv(rows, tile_r)

    # Prefer an even step count on 2-TC chips so the trailing block does not
    # serialize on a single core.
    if cfg["two_core"] and n_steps > 1 and n_steps % 2 == 1:
        t2 = max(granule, _round_up(pl.cdiv(rows, n_steps + 1), granule))
        if t2 < rows and pl.cdiv(rows, t2) % 2 == 0:
            tile_r = t2
            n_steps = pl.cdiv(rows, t2)

    # Deeper pipelining only when there are enough steps to use it.
    buffers = cfg["buffers"] if n_steps >= cfg["buffers"] else 2

    # TODO(synk): on v7x, verify in a trace that a plain "parallel" grid axis
    # is sharded across both TensorCores; if not, switch to CORE_PARALLEL /
    # pl.core_map.
    return pl.pallas_call(
        _square_kernel,
        out_shape=jax.ShapeDtypeStruct((rows, lanes), x2d.dtype),
        grid=(n_steps,),
        in_specs=[_make_spec((tile_r, lanes), buffers)],
        out_specs=_make_spec((tile_r, lanes), buffers),
        compiler_params=pltpu.CompilerParams(
            dimension_semantics=("parallel",),
            vmem_limit_bytes=cfg["vmem_limit"],
        ),
    )(x2d)


def act_square(x: jax.Array) -> jax.Array:
    """Elementwise square (== torch.square) computed in a Pallas TPU kernel."""
    orig_shape = x.shape
    if x.size == 0:
        return x  # empty tensor: nothing to compute, shape/dtype preserved
    if x.ndim == 0:
        return act_square(x.reshape(1, 1)).reshape(())

    cfg = _chip_config()
    size = x.size
    itemsize = jnp.dtype(x.dtype).itemsize
    granule = max(8, 32 // itemsize)

    if size % 128 == 0:
        # Lane-dense view: prefer the narrowest 128-lane slab whose row count
        # is sublane-granule aligned (unmasked sublane stores); else 128.
        lanes = None
        for c in (128, 256, 512, 1024):
            if size % c == 0 and (size // c) % granule == 0:
                lanes = c
                break
        if lanes is None:
            lanes = 128
        y2d = _square_2d(x.reshape(size // lanes, lanes), cfg)
        return y2d.reshape(orig_shape)

    # Ragged element count: natural (leading, last) 2-D view with the lane dim
    # full-extent; Pallas masks partial-lane stores.  No pad/slice round trip
    # -> no extra HBM traffic.
    lanes = orig_shape[-1]
    rows = size // lanes
    row_bytes = lanes * itemsize
    if (rows * row_bytes <= cfg["small_bytes"]
            or granule * row_bytes <= cfg["block_bytes"]):
        y2d = _square_2d(x.reshape(rows, lanes), cfg)
        return y2d.reshape(orig_shape)

    # Practically-unreachable corner: a handful of enormous ragged rows that
    # cannot be row-tiled into VMEM-sized blocks.  Pad the flat vector to 128
    # lanes (pays extra HBM traffic but stays correct for any shape).
    # TODO(synk): replace with a 128-aligned-prefix + tiny-tail split if this
    # path ever matters in practice.
    pad = (-size) % 128
    x2d = jnp.pad(x.reshape(-1), (0, pad)).reshape(-1, 128)
    y_flat = _square_2d(x2d, cfg).reshape(-1)[:size]
    return y_flat.reshape(orig_shape)


if __name__ == "__main__":
    key = jax.random.PRNGKey(0)
    k0, k1, k2 = jax.random.split(key, 3)

    # Primary: small NCHW activation consistent with FBCNet-style usage.
    x = jax.random.normal(k0, (2, 4, 16, 16), dtype=jnp.float32)
    y = jax.block_until_ready(act_square(x))
    assert y.shape == x.shape and y.dtype == x.dtype
    assert jnp.allclose(y, jnp.square(x), atol=1e-6, rtol=1e-6)

    # Multi-block tiled path (32 MiB f32 -> several ~8 MiB row blocks).
    x_big = jax.random.normal(k1, (32, 16, 128, 128), dtype=jnp.float32)
    y_big = jax.block_until_ready(act_square(x_big))
    assert jnp.allclose(y_big, jnp.square(x_big), atol=1e-6, rtol=1e-6)

    # Ragged (non-multiple-of-128) small path: masked lane stores, no padding.
    x_rag = jax.random.normal(k2, (3, 5, 7, 11), dtype=jnp.float32)
    y_rag = jax.block_until_ready(act_square(x_rag))
    assert jnp.allclose(y_rag, jnp.square(x_rag), atol=1e-6, rtol=1e-6)

    print("KERNEL_OK")
</pallas_src>

<mosaic_0001>
module attributes {stable_mosaic.version = 11 : i64} {
  func.func @_square_kernel(%arg0: i32, %arg1: memref<16x128xf32, #tpu.memory_space<vmem>>, %arg2: memref<16x128xf32, #tpu.memory_space<vmem>>) attributes {dimension_semantics = [#tpu.dimension_semantics<parallel>], iteration_bounds = array<i64: 1>, scalar_prefetch = 0 : i64, scratch_operands = 0 : i64, tpu.core_type = #tpu.core_type<tc>, window_params = [{transform_indices = @transform_0, window_bounds = array<i64: 16, 128>}, {transform_indices = @transform_1, window_bounds = array<i64: 16, 128>}]} {
    %c0 = arith.constant 0 : index
    %c0_0 = arith.constant 0 : index
    %0 = vector.load %arg1[%c0, %c0_0] : memref<16x128xf32, #tpu.memory_space<vmem>>, vector<16x128xf32>
    %1 = arith.mulf %0, %0 : vector<16x128xf32>
    %c0_1 = arith.constant 0 : index
    %c0_2 = arith.constant 0 : index
    %2 = vector.load %arg2[%c0_1, %c0_2] : memref<16x128xf32, #tpu.memory_space<vmem>>, vector<16x128xf32>
    tpu.vector_store %arg2[%c0_1, %c0_2], %1 {strides = array<i32>} : memref<16x128xf32, #tpu.memory_space<vmem>>, vector<16x128xf32>,
    return
  }
  func.func @transform_0(%arg0: i32) -> (i32, i32) {
    %c0_i32 = arith.constant 0 : i32
    %c0_i32_0 = arith.constant 0 : i32
    return %arg0, %c0_i32 : i32, i32
  }
  func.func @transform_1(%arg0: i32) -> (i32, i32) {
    %c0_i32 = arith.constant 0 : i32
    %c0_i32_0 = arith.constant 0 : i32
    return %arg0, %c0_i32 : i32, i32
  }
}

</mosaic_0001>

<bundles_post_ra>
// kernel: tpu_custom_call.1
= control target key start
LH: loop header
LB: loop body
LE: loop exit
PB: predicated region body
PF: predicated region fallthrough
CT: control target
= control target key end

     0   :  { %6 = vsyncpa [#allocation3], 0  ;;  %s136_s0 = inlined_call_operand.hbm [shape: f32[16,128], index: 0, kind: input, shape index: {}]   ;;  %s137_s1 = inlined_call_operand.hbm [shape: f32[16,128], index: 1, kind: output, shape index: {}]  }
   0x1   :  { %7 = vsyncpa [#allocation4], 0  ;;  %s98_s6 = smov [#allocation2]   ;;  %s50_s10 = scalar_lea.hbm %s136_s0, 256 }
   0x2   :  { %s13_s7 = sshll.u32 %s98_s6, 4  ;;  %p51_p0 = scmp.ne.s32.totalorder %s136_s0, %s50_s10  ;;  %s14_s7 = int_to_ptr.vmem [resolvable:$true] %s13_s7 }
   0x3   :  { %p54_p1 = scmp.lt.u32.totalorder %s50_s10, %s136_s0 }
   0x5   :  { %p56_p2 = pnand %p54_p1, %p51_p0 }
   0x7   :  { %59 = shalt.err (!%p56_p2)
}
   0x8   :  { %s60_s15 = scalar_lea.vmem %s14_s7, 256  ;;  %p65_p4 = scmp.lt.s32.totalorder %s14_s7, %s14_s7 }
   0x9   :  { %p61_p3 = scmp.ne.s32.totalorder %s14_s7, %s60_s15  ;;  %p66_p5 = scmp.lt.s32.totalorder %s60_s15, %s60_s15 }
   0xb   :  { %p67_p6 = por %p66_p5, %p65_p4 }
   0xd   :  { %p68_p7 = pnand %p67_p6, %p61_p3 }
   0xf   :  { %71 = shalt.err (!%p68_p7)
}
  0x10   :  { %s99_s16 = smov 128   ;;  %s100_s17 = smov 8  }
  0x11   :  { %19 = dma.hbm_to_vmem [thread:$0]  %s136_s0, 256, %s14_s7, [#allocation3], %s99_s16, %s99_s16, %s100_s17  }
  0x12   :  { %94 = dma.done.wait [#allocation3], 256  }
  0x13   :  { %95 = vsyncadd [#allocation3], 4294967040  ;;  %s101_s20 = smov [#allocation5]   ;;  %v23_v0 = vld [vmem:[#allocation2] sm:$0xff]  ;;  %v24_v1 = vld [vmem:[#allocation2 + $0x8] sm:$0xff] }
  0x14   :  { %s34_s21 = sshll.u32 %s101_s20, 4  ;;  %v25_v2 = vmul.f32 %v23_v0, %v23_v0  ;;  %v26_v3 = vmul.f32 %v24_v1, %v24_v1  ;;  %s35_s21 = int_to_ptr.vmem [resolvable:$true] %s34_s21 }
  0x15   :  { %s72_s22 = scalar_lea.vmem %s35_s21, 256  ;;  %p77_p9 = scmp.lt.s32.totalorder %s35_s21, %s35_s21 }
  0x16   :  { %27 = vst [vmem:[#allocation5] sm:$0xff] %v25_v2  ;;  %28 = vst [vmem:[#allocation5 + $0x8] sm:$0xff] %v26_v3  ;;  %p73_p8 = scmp.ne.s32.totalorder %s35_s21, %s72_s22  ;;  %p78_p10 = scmp.lt.s32.totalorder %s72_s22, %s72_s22 }
  0x18   :  { %p79_p11 = por %p78_p10, %p77_p9 }
  0x1a   :  { %p80_p12 = pnand %p79_p11, %p73_p8 }
  0x1c   :  { %83 = shalt.err (!%p80_p12)
}
  0x1d   :  { %s84_s24 = scalar_lea.hbm %s137_s1, 256 }
  0x1e   :  { %p85_p13 = scmp.ne.s32.totalorder %s137_s1, %s84_s24  ;;  %p88_p0 = scmp.lt.u32.totalorder %s84_s24, %s137_s1 }
  0x20   :  { %p90_p1 = pnand %p88_p0, %p85_p13 }
  0x22   :  { %93 = shalt.err (!%p90_p1)
}
  0x23   :  { %40 = dma.vmem_to_hbm [thread:$0]  %s35_s21, 256, %s137_s1, [#allocation4], %s99_s16, %s99_s16, %s100_s17  }
  0x24   :  { %96 = dma.done.wait [#allocation4], 256  }
  0x25   :  { %97 = vsyncadd [#allocation4], 4294967040 }
  0x26   :  { %44 = vsyncpa [#allocation3], 1 }
  0x27   :  { %45 = vsyncpa [#allocation4], 1 }

</bundles_post_ra>
